<compile_context>
chip_gen: v6e
topology: v6e:2x2x1
jax: 0.10.0
libtpu: 0.0.40
codegen_flags: <defaults>
</compile_context>

<pallas_src>
import functools

import jax
import jax.numpy as jnp
from jax import lax
from jax.experimental import pallas as pl
from jax.experimental.pallas import tpu as pltpu

EPS = 1e-5


def _round_up(v, m):
    return ((v + m - 1) // m) * m


def _vmem_capacity_bytes():
    try:
        return int(pltpu.get_tpu_info().vmem_capacity_bytes)
    except Exception:
        return 64 << 20  # conservative default (v7x per-TensorCore VMEM)


# ---------------------------------------------------------------------------
# Kernel bodies
# ---------------------------------------------------------------------------
def _bn_relu(h, gamma, beta, row_mask, inv_b):
    """Training-mode BatchNorm1d (biased batch variance, two-pass/centered)
    folded into one per-feature scale/bias FMA, followed by ReLU.  Padded batch
    rows are masked out of the statistics."""
    hm = h * row_mask
    mean = jnp.sum(hm, axis=0, keepdims=True) * inv_b
    cen = (h - mean) * row_mask
    var = jnp.sum(cen * cen, axis=0, keepdims=True) * inv_b
    scale = gamma * lax.rsqrt(var + EPS)            # EUP rsqrt
    bias = beta - mean * scale
    return jnp.maximum(h * scale + bias, 0.0)


def _mlp3(x, w1_ref, p1_ref, w2_ref, p2_ref, w3_ref, p3_ref, b_real):
    """fc1->bn1->relu -> fc2->bn2->relu -> fc3->bn3->relu (x, weights bf16;
    f32 accumulation; packed (3, dN) = [bias; gamma; beta] per layer)."""
    b_pad = x.shape[0]
    inv_b = jnp.float32(1.0 / b_real)
    row_mask = (lax.broadcasted_iota(jnp.int32, (b_pad, 1), 0)
                < b_real).astype(jnp.float32)

    def layer(h, w_ref, p_ref):
        p = p_ref[...]
        z = jnp.dot(h, w_ref[...], preferred_element_type=jnp.float32) + p[0:1, :]
        return _bn_relu(z, p[1:2, :], p[2:3, :], row_mask, inv_b)

    h = layer(x, w1_ref, p1_ref)
    h = layer(h.astype(jnp.bfloat16), w2_ref, p2_ref)
    h = layer(h.astype(jnp.bfloat16), w3_ref, p3_ref)
    return h


def _head_kernel(x_ref, w1_ref, p1_ref, w2_ref, p2_ref, w3_ref, p3_ref,
                 h3_ref, *, b_real):
    """Single-block: compute h3 once (hoisted out of the streamed fc4 grid)."""
    h3 = _mlp3(x_ref[...], w1_ref, p1_ref, w2_ref, p2_ref, w3_ref, p3_ref, b_real)
    h3_ref[...] = h3.astype(jnp.bfloat16)


def _fc4_kernel(h3_ref, w4_ref, b4_ref, out_ref):
    """Streamed tile of fc4 + tanh.  h3 is VMEM-resident (constant index);
    W4 / b4 / out tiles are double-buffered by the pipeline."""
    z = jnp.dot(h3_ref[...], w4_ref[...],
                preferred_element_type=jnp.float32) + b4_ref[...]
    out_ref[...] = jnp.tanh(z)


def _fused_kernel(x_ref, w1_ref, p1_ref, w2_ref, p2_ref, w3_ref, p3_ref,
                  w4_ref, b4_ref, out_ref, *, b_real):
    """Fast path: whole decoder in one block (no grid) when it fits VMEM."""
    h3 = _mlp3(x_ref[...], w1_ref, p1_ref, w2_ref, p2_ref, w3_ref, p3_ref, b_real)
    z = jnp.dot(h3.astype(jnp.bfloat16), w4_ref[...],
                preferred_element_type=jnp.float32) + b4_ref[...]
    out_ref[...] = jnp.tanh(z)


# ---------------------------------------------------------------------------
# Wrapper
# ---------------------------------------------------------------------------
def _pick_tile_n(d3, b_pad, d4_pad, vmem_cap, max_hint=None):
    """Lane tile for the streamed W4/b4/output axis.

    Must be a multiple of 128 that *divides* d4_pad (no zero-column padding of
    the dominant W4 stream).  Budgeted against the full double-buffered VMEM
    picture: (W4 + out + b4) tiles x2 buffers + resident bf16 h3 x2 buffers."""
    per_lane = 2 * (d3 * 2 + b_pad * 4 + 4)        # 2 buffers per streamed array
    fixed = 2 * (b_pad * d3 * 2) + (2 << 20)        # resident h3 (x2 bufs) + margin
    budget = int(vmem_cap) * 3 // 4
    two_core = vmem_cap <= (64 << 20)               # v7x heuristic: 64 MiB VMEM, 2 TCs
    cap_lanes = 4096 if two_core else 8192          # bigger tiles on 128 MiB parts
    max_lanes = max(128, min(cap_lanes, (budget - fixed) // per_lane))
    if max_hint is not None:
        max_lanes = min(max_lanes, max(128, _round_up(int(max_hint), 128)))

    q = d4_pad // 128
    cands = [128 * k for k in range(1, q + 1)
             if q % k == 0 and 128 * k <= max_lanes]
    if not cands:
        return 128
    if two_core:
        # Prefer an even number (>= 2) of balanced grid steps so the
        # ("parallel",) axis actually feeds both TensorCores on v7x.
        even = [t for t in cands
                if (d4_pad // t) >= 2 and (d4_pad // t) % 2 == 0]
        if even:
            return max(even)
    return max(cands)


def point_decoder_normal(x, params, num_points, *, tile_n=None, force_stream=False):
    """x: (B, bottleneck) f32 -> (B, num_points, 6) f32 (point-major, as the
    PyTorch module's final .transpose(2, 1))."""
    B, bneck = x.shape
    d3 = params["w3"].shape[1]
    d4 = num_points * 6

    b_pad = _round_up(max(B, 1), 8)
    d4_pad = _round_up(d4, 128)                     # lane padding only, not tile_n
    vmem_cap = _vmem_capacity_bytes()

    x_p = jnp.pad(x, ((0, b_pad - B), (0, 0))).astype(jnp.bfloat16)

    def pack(b, g, be):                             # (3, dN) = [bias; gamma; beta]
        return jnp.concatenate(
            [b.reshape(1, -1), g.reshape(1, -1), be.reshape(1, -1)],
            axis=0).astype(jnp.float32)

    w1 = params["w1"].astype(jnp.bfloat16)
    w2 = params["w2"].astype(jnp.bfloat16)
    w3 = params["w3"].astype(jnp.bfloat16)
    p1 = pack(params["b1"], params["g1"], params["be1"])
    p2 = pack(params["b2"], params["g2"], params["be2"])
    p3 = pack(params["b3"], params["g3"], params["be3"])

    # Pre-permute fc4 columns to point-major ((n, c) interleaved): the kernel's
    # lane-dense output then reshapes directly to (B, N, 6) -- no lane-sparse
    # post-kernel transpose.  One-time weight shuffle, zero runtime cost.
    w4_pm = params["w4"].reshape(d3, 6, num_points).transpose(0, 2, 1).reshape(d3, d4)
    b4_pm = params["b4"].reshape(6, num_points).T.reshape(1, d4)
    w4_p = jnp.pad(w4_pm, ((0, 0), (0, d4_pad - d4))).astype(jnp.bfloat16)
    b4_p = jnp.pad(b4_pm, ((0, 0), (0, d4_pad - d4))).astype(jnp.float32)

    head_args = (x_p, w1, p1, w2, p2, w3, p3)
    head_bytes = sum(int(a.size) * a.dtype.itemsize for a in head_args)
    stream_bytes = int(w4_p.size) * 2 + int(b4_p.size) * 4 + b_pad * d4_pad * 4

    use_fused = (not force_stream
                 and stream_bytes <= (4 << 20)
                 and (head_bytes + stream_bytes) * 2 + (4 << 20) <= vmem_cap // 2)

    if use_fused:
        # Fast path: single block, no grid, no per-step overhead, no h3 round trip.
        vmem_limit = max(16 << 20, (head_bytes + stream_bytes) * 2 + (8 << 20))
        vmem_limit = int(min(vmem_limit, vmem_cap - (4 << 20)))
        out_flat = pl.pallas_call(
            functools.partial(_fused_kernel, b_real=int(B)),
            out_shape=jax.ShapeDtypeStruct((b_pad, d4_pad), jnp.float32),
            compiler_params=pltpu.CompilerParams(vmem_limit_bytes=vmem_limit),
        )(*head_args, w4_p, b4_p)
        return out_flat[:B, :d4].reshape(B, num_points, 6)

    # --- Step 1: compute h3 once (hoisted out of the streamed grid) ----------
    head_vmem = max(16 << 20, head_bytes * 2 + (8 << 20))
    head_vmem = int(min(head_vmem, vmem_cap - (4 << 20)))
    h3 = pl.pallas_call(
        functools.partial(_head_kernel, b_real=int(B)),
        out_shape=jax.ShapeDtypeStruct((b_pad, d3), jnp.bfloat16),
        compiler_params=pltpu.CompilerParams(vmem_limit_bytes=head_vmem),
    )(*head_args)

    # --- Step 2: streamed fc4 + tanh over the padded 6*num_points axis -------
    tn = _pick_tile_n(d3, b_pad, d4_pad, vmem_cap, max_hint=tile_n)
    grid_n = d4_pad // tn

    per_lane = 2 * (d3 * 2 + b_pad * 4 + 4)
    vmem_limit = max(16 << 20, per_lane * tn + 2 * b_pad * d3 * 2 + (4 << 20))
    vmem_limit = int(min(vmem_limit, vmem_cap - (4 << 20)))

    cost = pl.CostEstimate(
        flops=int(2 * b_pad * d3 * d4_pad),
        transcendentals=int(b_pad * d4_pad),
        bytes_accessed=int(stream_bytes + b_pad * d3 * 2),
    )

    out_flat = pl.pallas_call(
        _fc4_kernel,
        grid=(grid_n,),
        in_specs=[
            pl.BlockSpec((b_pad, d3), lambda j: (0, 0)),    # h3: VMEM-resident
            pl.BlockSpec((d3, tn), lambda j: (0, j)),        # streamed W4 tile
            pl.BlockSpec((1, tn), lambda j: (0, j)),         # streamed b4 tile
        ],
        out_specs=pl.BlockSpec((b_pad, tn), lambda j: (0, j)),
        out_shape=jax.ShapeDtypeStruct((b_pad, d4_pad), jnp.float32),
        compiler_params=pltpu.CompilerParams(
            dimension_semantics=("parallel",),
            vmem_limit_bytes=vmem_limit,
        ),
        cost_estimate=cost,
    )(h3, w4_p, b4_p)

    return out_flat[:B, :d4].reshape(B, num_points, 6)


# ---------------------------------------------------------------------------
# Params / reference / test harness
# ---------------------------------------------------------------------------
def init_params(key, bottleneck_size, num_points):
    ks = jax.random.split(key, 4)
    d1 = bottleneck_size
    d2 = bottleneck_size // 2
    d3 = bottleneck_size // 4
    d4 = num_points * 6

    def lin(k, din, dout):
        kw, kb = jax.random.split(k)
        scale = 1.0 / jnp.sqrt(din)
        w = jax.random.uniform(kw, (din, dout), jnp.float32, -scale, scale)
        b = jax.random.uniform(kb, (1, dout), jnp.float32, -scale, scale)
        return w, b

    w1, b1 = lin(ks[0], bottleneck_size, d1)
    w2, b2 = lin(ks[1], d1, d2)
    w3, b3 = lin(ks[2], d2, d3)
    w4, b4 = lin(ks[3], d3, d4)

    ones, zeros = jnp.ones, jnp.zeros
    return {
        "w1": w1, "b1": b1, "g1": ones((1, d1), jnp.float32), "be1": zeros((1, d1), jnp.float32),
        "w2": w2, "b2": b2, "g2": ones((1, d2), jnp.float32), "be2": zeros((1, d2), jnp.float32),
        "w3": w3, "b3": b3, "g3": ones((1, d3), jnp.float32), "be3": zeros((1, d3), jnp.float32),
        "w4": w4, "b4": b4,
    }


def reference(x, p):
    """PyTorch-style training-mode reference (batch mean, biased variance).
    Mirrors the kernel's intentional bf16 weight/activation casts (f32 MXU
    accumulation) so tolerances stay tight; BatchNorm re-normalizes each layer
    so the deviation from a pure-f32 pipeline is small.  Flag if strict f32
    parity with the PyTorch module is required."""
    def bn_relu(h, g, b):
        m = jnp.mean(h, axis=0, keepdims=True)
        v = jnp.mean((h - m) ** 2, axis=0, keepdims=True)
        return jnp.maximum((h - m) / jnp.sqrt(v + EPS) * g + b, 0.0)

    def mm(a, w):
        return jnp.dot(a.astype(jnp.bfloat16), w.astype(jnp.bfloat16),
                       preferred_element_type=jnp.float32)

    h = bn_relu(mm(x, p["w1"]) + p["b1"], p["g1"], p["be1"])
    h = bn_relu(mm(h, p["w2"]) + p["b2"], p["g2"], p["be2"])
    h = bn_relu(mm(h, p["w3"]) + p["b3"], p["g3"], p["be3"])
    h = jnp.tanh(mm(h, p["w4"]) + p["b4"])
    B = x.shape[0]
    return jnp.transpose(h.reshape(B, 6, -1), (0, 2, 1))


if __name__ == "__main__":
    # Small shapes consistent with the module (toy bottleneck / point count).
    batch = 4
    bottleneck_size = 64
    num_points = 250     # 6*250 = 1500 -> exercises lane padding up to 1536

    key = jax.random.PRNGKey(0)
    kx, kp = jax.random.split(key)
    x = jax.random.normal(kx, (batch, bottleneck_size), jnp.float32)
    params = init_params(kp, bottleneck_size, num_points)

    ref = reference(x, params)

    # Fast single-block fused path (auto-selected at toy scale).
    out_fused = jax.block_until_ready(point_decoder_normal(x, params, num_points))
    assert out_fused.shape == (batch, num_points, 6), out_fused.shape
    assert jnp.allclose(out_fused, ref, atol=5e-3, rtol=5e-3), float(
        jnp.max(jnp.abs(out_fused - ref)))

    # Streamed path (hoisted h3 + gridded fc4), forced for coverage; tile hint
    # of 512 exercises a multi-step grid (d4_pad = 1536).
    out_stream = jax.block_until_ready(
        point_decoder_normal(x, params, num_points, tile_n=512, force_stream=True))
    assert out_stream.shape == (batch, num_points, 6), out_stream.shape
    assert jnp.allclose(out_stream, ref, atol=5e-3, rtol=5e-3), float(
        jnp.max(jnp.abs(out_stream - ref)))

    print("KERNEL_OK")
</pallas_src>

<mosaic_0001>
module attributes {stable_mosaic.version = 11 : i64} {
  func.func @_fused_kernel(%arg0: memref<8x64xbf16, #tpu.memory_space<vmem>>, %arg1: memref<64x64xbf16, #tpu.memory_space<vmem>>, %arg2: memref<3x64xf32, #tpu.memory_space<vmem>>, %arg3: memref<64x32xbf16, #tpu.memory_space<vmem>>, %arg4: memref<3x32xf32, #tpu.memory_space<vmem>>, %arg5: memref<32x16xbf16, #tpu.memory_space<vmem>>, %arg6: memref<3x16xf32, #tpu.memory_space<vmem>>, %arg7: memref<16x1536xbf16, #tpu.memory_space<vmem>>, %arg8: memref<1x1536xf32, #tpu.memory_space<vmem>>, %arg9: memref<8x1536xf32, #tpu.memory_space<vmem>>) attributes {dimension_semantics = [], scalar_prefetch = 0 : i64, scratch_operands = 0 : i64, tpu.core_type = #tpu.core_type<tc>} {
    %c0 = arith.constant 0 : index
    %c0_0 = arith.constant 0 : index
    %0 = vector.load %arg0[%c0, %c0_0] : memref<8x64xbf16, #tpu.memory_space<vmem>>, vector<8x64xbf16>
    %1 = tpu.iota {dimensions = array<i32: 0>} : vector<8x1xi32>
    %c4_i32 = arith.constant 4 : i32
    %2 = vector.broadcast %c4_i32 : i32 to vector<8x1xi32>
    %3 = arith.cmpi slt, %1, %2 : vector<8x1xi32>
    %4 = arith.extui %3 : vector<8x1xi1> to vector<8x1xi32>
    %5 = arith.sitofp %4 : vector<8x1xi32> to vector<8x1xf32>
    %c0_1 = arith.constant 0 : index
    %c0_2 = arith.constant 0 : index
    %6 = vector.load %arg2[%c0_1, %c0_2] : memref<3x64xf32, #tpu.memory_space<vmem>>, vector<3x64xf32>
    %c0_3 = arith.constant 0 : index
    %c0_4 = arith.constant 0 : index
    %7 = vector.load %arg1[%c0_3, %c0_4] : memref<64x64xbf16, #tpu.memory_space<vmem>>, vector<64x64xbf16>
    %cst = arith.constant dense<0.000000e+00> : vector<8x64xf32>
    %8 = tpu.matmul %0, %7, %cst {dimension_numbers = #tpu.dot_dimension_numbers<[1], [0], [0], [1], [0, 0, 1, 1], [], []>} : vector<8x64xbf16>, vector<64x64xbf16>, vector<8x64xf32> -> vector<8x64xf32>
    %9 = vector.extract_strided_slice %6 {offsets = [0, 0], sizes = [1, 64], strides = [1, 1]} : vector<3x64xf32> to vector<1x64xf32>
    %10 = vector.broadcast %9 : vector<1x64xf32> to vector<8x64xf32>
    %11 = arith.addf %8, %10 : vector<8x64xf32>
    %12 = vector.extract_strided_slice %6 {offsets = [1, 0], sizes = [1, 64], strides = [1, 1]} : vector<3x64xf32> to vector<1x64xf32>
    %13 = vector.extract_strided_slice %6 {offsets = [2, 0], sizes = [1, 64], strides = [1, 1]} : vector<3x64xf32> to vector<1x64xf32>
    %14 = vector.broadcast %5 : vector<8x1xf32> to vector<8x64xf32>
    %15 = arith.mulf %11, %14 : vector<8x64xf32>
    %cst_5 = arith.constant dense<0.000000e+00> : vector<64xf32>
    %16 = vector.multi_reduction <add>, %15, %cst_5 [0] : vector<8x64xf32> to vector<64xf32>
    %17 = vector.shape_cast %16 : vector<64xf32> to vector<1x64xf32>
    %cst_6 = arith.constant 2.500000e-01 : f32
    %18 = vector.broadcast %cst_6 : f32 to vector<1x64xf32>
    %19 = arith.mulf %17, %18 : vector<1x64xf32>
    %20 = vector.broadcast %19 : vector<1x64xf32> to vector<8x64xf32>
    %21 = arith.subf %11, %20 : vector<8x64xf32>
    %22 = vector.broadcast %5 : vector<8x1xf32> to vector<8x64xf32>
    %23 = arith.mulf %21, %22 : vector<8x64xf32>
    %24 = arith.mulf %23, %23 : vector<8x64xf32>
    %cst_7 = arith.constant dense<0.000000e+00> : vector<64xf32>
    %25 = vector.multi_reduction <add>, %24, %cst_7 [0] : vector<8x64xf32> to vector<64xf32>
    %26 = vector.shape_cast %25 : vector<64xf32> to vector<1x64xf32>
    %cst_8 = arith.constant 2.500000e-01 : f32
    %27 = vector.broadcast %cst_8 : f32 to vector<1x64xf32>
    %28 = arith.mulf %26, %27 : vector<1x64xf32>
    %cst_9 = arith.constant 9.99999974E-6 : f32
    %29 = vector.broadcast %cst_9 : f32 to vector<1x64xf32>
    %30 = arith.addf %28, %29 : vector<1x64xf32>
    %31 = math.rsqrt %30 : vector<1x64xf32>
    %32 = arith.mulf %12, %31 : vector<1x64xf32>
    %33 = arith.mulf %19, %32 : vector<1x64xf32>
    %34 = arith.subf %13, %33 : vector<1x64xf32>
    %35 = vector.broadcast %32 : vector<1x64xf32> to vector<8x64xf32>
    %36 = arith.mulf %11, %35 : vector<8x64xf32>
    %37 = vector.broadcast %34 : vector<1x64xf32> to vector<8x64xf32>
    %38 = arith.addf %36, %37 : vector<8x64xf32>
    %cst_10 = arith.constant 0.000000e+00 : f32
    %39 = vector.broadcast %cst_10 : f32 to vector<8x64xf32>
    %40 = arith.maximumf %38, %39 : vector<8x64xf32>
    %41 = arith.truncf %40 : vector<8x64xf32> to vector<8x64xbf16>
    %c0_11 = arith.constant 0 : index
    %c0_12 = arith.constant 0 : index
    %42 = vector.load %arg4[%c0_11, %c0_12] : memref<3x32xf32, #tpu.memory_space<vmem>>, vector<3x32xf32>
    %c0_13 = arith.constant 0 : index
    %c0_14 = arith.constant 0 : index
    %43 = vector.load %arg3[%c0_13, %c0_14] : memref<64x32xbf16, #tpu.memory_space<vmem>>, vector<64x32xbf16>
    %cst_15 = arith.constant dense<0.000000e+00> : vector<8x32xf32>
    %44 = tpu.matmul %41, %43, %cst_15 {dimension_numbers = #tpu.dot_dimension_numbers<[1], [0], [0], [1], [0, 0, 1, 1], [], []>} : vector<8x64xbf16>, vector<64x32xbf16>, vector<8x32xf32> -> vector<8x32xf32>
    %45 = vector.extract_strided_slice %42 {offsets = [0, 0], sizes = [1, 32], strides = [1, 1]} : vector<3x32xf32> to vector<1x32xf32>
    %46 = vector.broadcast %45 : vector<1x32xf32> to vector<8x32xf32>
    %47 = arith.addf %44, %46 : vector<8x32xf32>
    %48 = vector.extract_strided_slice %42 {offsets = [1, 0], sizes = [1, 32], strides = [1, 1]} : vector<3x32xf32> to vector<1x32xf32>
    %49 = vector.extract_strided_slice %42 {offsets = [2, 0], sizes = [1, 32], strides = [1, 1]} : vector<3x32xf32> to vector<1x32xf32>
    %50 = vector.broadcast %5 : vector<8x1xf32> to vector<8x32xf32>
    %51 = arith.mulf %47, %50 : vector<8x32xf32>
    %cst_16 = arith.constant dense<0.000000e+00> : vector<32xf32>
    %52 = vector.multi_reduction <add>, %51, %cst_16 [0] : vector<8x32xf32> to vector<32xf32>
    %53 = vector.shape_cast %52 : vector<32xf32> to vector<1x32xf32>
    %cst_17 = arith.constant 2.500000e-01 : f32
    %54 = vector.broadcast %cst_17 : f32 to vector<1x32xf32>
    %55 = arith.mulf %53, %54 : vector<1x32xf32>
    %56 = vector.broadcast %55 : vector<1x32xf32> to vector<8x32xf32>
    %57 = arith.subf %47, %56 : vector<8x32xf32>
    %58 = vector.broadcast %5 : vector<8x1xf32> to vector<8x32xf32>
    %59 = arith.mulf %57, %58 : vector<8x32xf32>
    %60 = arith.mulf %59, %59 : vector<8x32xf32>
    %cst_18 = arith.constant dense<0.000000e+00> : vector<32xf32>
    %61 = vector.multi_reduction <add>, %60, %cst_18 [0] : vector<8x32xf32> to vector<32xf32>
    %62 = vector.shape_cast %61 : vector<32xf32> to vector<1x32xf32>
    %cst_19 = arith.constant 2.500000e-01 : f32
    %63 = vector.broadcast %cst_19 : f32 to vector<1x32xf32>
    %64 = arith.mulf %62, %63 : vector<1x32xf32>
    %cst_20 = arith.constant 9.99999974E-6 : f32
    %65 = vector.broadcast %cst_20 : f32 to vector<1x32xf32>
    %66 = arith.addf %64, %65 : vector<1x32xf32>
    %67 = math.rsqrt %66 : vector<1x32xf32>
    %68 = arith.mulf %48, %67 : vector<1x32xf32>
    %69 = arith.mulf %55, %68 : vector<1x32xf32>
    %70 = arith.subf %49, %69 : vector<1x32xf32>
    %71 = vector.broadcast %68 : vector<1x32xf32> to vector<8x32xf32>
    %72 = arith.mulf %47, %71 : vector<8x32xf32>
    %73 = vector.broadcast %70 : vector<1x32xf32> to vector<8x32xf32>
    %74 = arith.addf %72, %73 : vector<8x32xf32>
    %cst_21 = arith.constant 0.000000e+00 : f32
    %75 = vector.broadcast %cst_21 : f32 to vector<8x32xf32>
    %76 = arith.maximumf %74, %75 : vector<8x32xf32>
    %77 = arith.truncf %76 : vector<8x32xf32> to vector<8x32xbf16>
    %c0_22 = arith.constant 0 : index
    %c0_23 = arith.constant 0 : index
    %78 = vector.load %arg6[%c0_22, %c0_23] : memref<3x16xf32, #tpu.memory_space<vmem>>, vector<3x16xf32>
    %c0_24 = arith.constant 0 : index
    %c0_25 = arith.constant 0 : index
    %79 = vector.load %arg5[%c0_24, %c0_25] : memref<32x16xbf16, #tpu.memory_space<vmem>>, vector<32x16xbf16>
    %cst_26 = arith.constant dense<0.000000e+00> : vector<8x16xf32>
    %80 = tpu.matmul %77, %79, %cst_26 {dimension_numbers = #tpu.dot_dimension_numbers<[1], [0], [0], [1], [0, 0, 1, 1], [], []>} : vector<8x32xbf16>, vector<32x16xbf16>, vector<8x16xf32> -> vector<8x16xf32>
    %81 = vector.extract_strided_slice %78 {offsets = [0, 0], sizes = [1, 16], strides = [1, 1]} : vector<3x16xf32> to vector<1x16xf32>
    %82 = vector.broadcast %81 : vector<1x16xf32> to vector<8x16xf32>
    %83 = arith.addf %80, %82 : vector<8x16xf32>
    %84 = vector.extract_strided_slice %78 {offsets = [1, 0], sizes = [1, 16], strides = [1, 1]} : vector<3x16xf32> to vector<1x16xf32>
    %85 = vector.extract_strided_slice %78 {offsets = [2, 0], sizes = [1, 16], strides = [1, 1]} : vector<3x16xf32> to vector<1x16xf32>
    %86 = vector.broadcast %5 : vector<8x1xf32> to vector<8x16xf32>
    %87 = arith.mulf %83, %86 : vector<8x16xf32>
    %cst_27 = arith.constant dense<0.000000e+00> : vector<16xf32>
    %88 = vector.multi_reduction <add>, %87, %cst_27 [0] : vector<8x16xf32> to vector<16xf32>
    %89 = vector.shape_cast %88 : vector<16xf32> to vector<1x16xf32>
    %cst_28 = arith.constant 2.500000e-01 : f32
    %90 = vector.broadcast %cst_28 : f32 to vector<1x16xf32>
    %91 = arith.mulf %89, %90 : vector<1x16xf32>
    %92 = vector.broadcast %91 : vector<1x16xf32> to vector<8x16xf32>
    %93 = arith.subf %83, %92 : vector<8x16xf32>
    %94 = vector.broadcast %5 : vector<8x1xf32> to vector<8x16xf32>
    %95 = arith.mulf %93, %94 : vector<8x16xf32>
    %96 = arith.mulf %95, %95 : vector<8x16xf32>
    %cst_29 = arith.constant dense<0.000000e+00> : vector<16xf32>
    %97 = vector.multi_reduction <add>, %96, %cst_29 [0] : vector<8x16xf32> to vector<16xf32>
    %98 = vector.shape_cast %97 : vector<16xf32> to vector<1x16xf32>
    %cst_30 = arith.constant 2.500000e-01 : f32
    %99 = vector.broadcast %cst_30 : f32 to vector<1x16xf32>
    %100 = arith.mulf %98, %99 : vector<1x16xf32>
    %cst_31 = arith.constant 9.99999974E-6 : f32
    %101 = vector.broadcast %cst_31 : f32 to vector<1x16xf32>
    %102 = arith.addf %100, %101 : vector<1x16xf32>
    %103 = math.rsqrt %102 : vector<1x16xf32>
    %104 = arith.mulf %84, %103 : vector<1x16xf32>
    %105 = arith.mulf %91, %104 : vector<1x16xf32>
    %106 = arith.subf %85, %105 : vector<1x16xf32>
    %107 = vector.broadcast %104 : vector<1x16xf32> to vector<8x16xf32>
    %108 = arith.mulf %83, %107 : vector<8x16xf32>
    %109 = vector.broadcast %106 : vector<1x16xf32> to vector<8x16xf32>
    %110 = arith.addf %108, %109 : vector<8x16xf32>
    %cst_32 = arith.constant 0.000000e+00 : f32
    %111 = vector.broadcast %cst_32 : f32 to vector<8x16xf32>
    %112 = arith.maximumf %110, %111 : vector<8x16xf32>
    %113 = arith.truncf %112 : vector<8x16xf32> to vector<8x16xbf16>
    %c0_33 = arith.constant 0 : index
    %c0_34 = arith.constant 0 : index
    %114 = vector.load %arg7[%c0_33, %c0_34] : memref<16x1536xbf16, #tpu.memory_space<vmem>>, vector<16x1536xbf16>
    %cst_35 = arith.constant dense<0.000000e+00> : vector<8x1536xf32>
    %115 = tpu.matmul %113, %114, %cst_35 {dimension_numbers = #tpu.dot_dimension_numbers<[1], [0], [0], [1], [0, 0, 1, 1], [], []>} : vector<8x16xbf16>, vector<16x1536xbf16>, vector<8x1536xf32> -> vector<8x1536xf32>
    %c0_36 = arith.constant 0 : index
    %c0_37 = arith.constant 0 : index
    %116 = vector.load %arg8[%c0_36, %c0_37] : memref<1x1536xf32, #tpu.memory_space<vmem>>, vector<1x1536xf32>
    %117 = vector.broadcast %116 : vector<1x1536xf32> to vector<8x1536xf32>
    %118 = arith.addf %115, %117 : vector<8x1536xf32>
    %119 = math.tanh %118 : vector<8x1536xf32>
    %c0_38 = arith.constant 0 : index
    %c0_39 = arith.constant 0 : index
    %120 = vector.load %arg9[%c0_38, %c0_39] : memref<8x1536xf32, #tpu.memory_space<vmem>>, vector<8x1536xf32>
    tpu.vector_store %arg9[%c0_38, %c0_39], %119 {strides = array<i32>} : memref<8x1536xf32, #tpu.memory_space<vmem>>, vector<8x1536xf32>,
    return
  }
}

</mosaic_0001>

<bundles_post_ra>
// kernel: tpu_custom_call.1
= control target key start
LH: loop header
LB: loop body
LE: loop exit
PB: predicated region body
PF: predicated region fallthrough
CT: control target
= control target key end

     0   :  { %14 = vsyncpa [#allocation3], 0  ;;  %s1237_s0 = inlined_call_operand.vmem [shape: bf16[8,64], index: 0, kind: input, shape index: {}]   ;;  %s1238_s1 = inlined_call_operand.vmem [shape: bf16[64,64], index: 1, kind: input, shape index: {}]   ;;  %s1239_s2 = inlined_call_operand.vmem [shape: f32[3,64], index: 2, kind: input, shape index: {}]   ;;  %s1240_s3 = inlined_call_operand.vmem [shape: bf16[64,32], index: 3, kind: input, shape index: {}]   ;;  %s1241_s4 = inlined_call_operand.vmem [shape: f32[3,32], index: 4, kind: input, shape index: {}]   ;;  %s1242_s5 = inlined_call_operand.vmem [shape: bf16[32,16], index: 5, kind: input, shape index: {}]   ;;  %s1243_s6 = inlined_call_operand.hbm [shape: f32[3,16], index: 6, kind: input, shape index: {}]   ;;  %s1244_s7 = inlined_call_operand.hbm [shape: bf16[16,1536], index: 7, kind: input, shape index: {}]   ;;  %s1245_s8 = inlined_call_operand.vmem [shape: f32[1,1536], index: 8, kind: input, shape index: {}]   ;;  %s1246_s9 = inlined_call_operand.hbm [shape: f32[8,1536], index: 9, kind: output, shape index: {}]  }
   0x1   :  { %15 = vsyncpa [#allocation6], 0 }
   0x2   :  { %16 = vsyncpa [#allocation4], 0  ;;  %s1047_s30 = smov [#allocation2]   ;;  %s1048_s11 = smov [#allocation5]  }
   0x3   :  { %s35_s10 = sshll.u32 %s1047_s30, 4  ;;  %s44_s12 = sshll.u32 %s1048_s11, 4  ;;  %s36_s10 = int_to_ptr.vmem [resolvable:$true] %s35_s10  ;;  %s45_s12 = int_to_ptr.vmem [resolvable:$true] %s44_s12 }
   0x4   :  { %s989_s13 = scalar_lea.vmem %s36_s10, 64  ;;  %p994_p1 = scmp.lt.s32.totalorder %s36_s10, %s36_s10 }
   0x5   :  { %p990_p0 = scmp.ne.s32.totalorder %s36_s10, %s989_s13  ;;  %p995_p2 = scmp.lt.s32.totalorder %s989_s13, %s989_s13 }
   0x7   :  { %p996_p3 = por %p995_p2, %p994_p1 }
   0x9   :  { %p997_p4 = pnand %p996_p3, %p990_p0 }
   0xb   :  { %1000 = shalt.err (!%p997_p4)
}
   0xc   :  { %38 = dma.hbm_to_vmem [thread:$0]  %s1243_s6, 64, %s36_s10, [#allocation3]  }
   0xd   :  { %s1009_s16 = scalar_lea.vmem %s45_s12, 1536  ;;  %p1014_p6 = scmp.lt.s32.totalorder %s45_s12, %s45_s12 }
   0xe   :  { %p1010_p5 = scmp.ne.s32.totalorder %s45_s12, %s1009_s16  ;;  %p1015_p7 = scmp.lt.s32.totalorder %s1009_s16, %s1009_s16 }
  0x10   :  { %p1016_p8 = por %p1015_p7, %p1014_p6 }
  0x12   :  { %p1017_p9 = pnand %p1016_p8, %p1010_p5 }
  0x14   :  { %1020 = shalt.err (!%p1017_p9)
}
  0x15   :  { %s1049_s17 = smov 768   ;;  %s1050_s18 = smov 48  }
  0x16   :  { %50 = dma.hbm_to_vmem [thread:$0]  %s1244_s7, 1536, %s45_s12, [#allocation6], %s1049_s17, %s1049_s17, %s1050_s18  }
  0x17   :  { %1041 = dma.done.wait [#allocation3], 64  }
  0x18   :  { %1042 = vsyncadd [#allocation3], 4294967232 }
  0x19   :  { %1043 = dma.done.wait [#allocation6], 1536  }
  0x1a   :  { %1044 = vsyncadd [#allocation6], 4294965760  ;;  %v1051_v0 = vmov 0.0   ;;  %vm1052_vm0 = vmmov 0   ;;  %v923_v1 = vld [vmem:[%s1238_s1 + $0x18] sm:$0xff]   ;;  %v924_v2 = vld [vmem:[%s1238_s1 + $0x10] sm:$0xff]   ;;  %v61_v10 = vlaneseq }
  0x1b   :  { %883 = vmatprep.subr.bf16.mxu0 %v1051_v0  ;;  %891 = vmatprep.mubr.msk.bf16.mxu0 %vm1052_vm0, %v1051_v0  ;;  %v925_v3 = vld [vmem:[%s1238_s1 + $0x8] sm:$0xff]   ;;  %v926_v4 = vld [vmem:[%s1238_s1] sm:$0xff]   ;;  %vm103_vm1 = vcmask 523264   ;;  %v927_v6 = vld [vmem:[%s1240_s3 + $0x18] sm:$0xff]   ;;  %vm268_vm3 = vcmask 261120   ;;  %vm373_vm4 = vcmask 130048  }
  0x1c   :  { %895 = vmatprep.subr.bf16.mxu1 %v1051_v0  ;;  %903 = vmatprep.mubr.msk.bf16.mxu1 %vm1052_vm0, %v1051_v0  ;;  %v60_v5 = vld [vmem:[%s1237_s0] sm:$0xf]  ;;  %v928_v7 = vld [vmem:[%s1240_s3 + $0x10] sm:$0xff]   ;;  %v929_v8 = vld [vmem:[%s1240_s3 + $0x8] sm:$0xff]   ;;  %v1154_v11 = vshrl.u32 %v61_v10, 7 }
  0x1d   :  { %884 = vmatpush3.bf16.msra.mxu0 %v923_v1  ;;  %896 = vmatpush3.bf16.msra.mxu1 %v927_v6  ;;  %v930_v9 = vld [vmem:[%s1240_s3] sm:$0xff]   ;;  %v931_v55 = vld [vmem:[%s1242_s5 + $0x8] sm:$0xff]  }
  0x1e   :  { %885 = vmatprep.subr.bf16.mxu0 %v1051_v0  ;;  %897 = vmatprep.subr.bf16.mxu1 %v1051_v0  ;;  %v1157_v12 = vsub.s32 0, %v1154_v11  ;;  %v66_v13 = vld [vmem:[%s1239_s2] sm:$0x7]  ;;  %vm63_vm2 = vcmp.lt.s32.totalorder %v1154_v11, 4  ;;  %v1172_v44 = vsub.s32 1, %v1154_v11  ;;  %v1176_v48 = vsub.s32 2, %v1154_v11 }
  0x1f   :  { %v1165_v15 = vsel %vm63_vm2, 1.0, %v1051_v0  ;;  %v932_v56 = vld [vmem:[%s1242_s5] sm:$0xff]  }
  0x20   :  { %v78_v14 = vrot.slane %v66_v13, %v1157_v12  ;;  %v187_v57 = vld [vmem:[%s1241_s4] sm:$0x7] }
  0x21   :  { %886 = vmatpush3.bf16.msra.mxu0 %v924_v2  ;;  %898 = vmatpush3.bf16.msra.mxu1 %v928_v7  ;;  %v199_v58 = vrot.slane %v187_v57, %v1157_v12 }
  0x22   :  { %887 = vmatprep.subr.bf16.mxu0 %v1051_v0  ;;  %899 = vmatprep.subr.bf16.mxu1 %v1051_v0 }
  0x25   :  { %888 = vmatpush3.bf16.msra.mxu0 %v925_v3  ;;  %900 = vmatpush3.bf16.msra.mxu1 %v929_v8 }
  0x26   :  { %889 = vmatprep.subr.bf16.mxu0 %v1051_v0  ;;  %901 = vmatprep.subr.bf16.mxu1 %v1051_v0 }
  0x29   :  { %890 = vmatpush3.bf16.msra.mxu0 %v926_v4  ;;  %902 = vmatpush3.bf16.msra.mxu1 %v930_v9 }
  0x2a   :  { %907 = vmatprep.subr.bf16.mxu0 %v1051_v0 }
  0x2c   :  { %892 = vmatmul.mubr.msk.bf16.vlgmr.msra.gmra.mxu0 %vm103_vm1, %v60_v5 }
  0x2d   :  { %911 = vmatprep.mubr.msk.bf16.mxu0 %vm1052_vm0, %v1051_v0  ;;  %908 = vmatpush3.bf16.msra.mxu0 %v931_v55 }
  0x2e   :  { %909 = vmatprep.subr.bf16.mxu0 %v1051_v0 }
  0x31   :  { %910 = vmatpush3.bf16.msra.mxu0 %v932_v56 }
  0xec   :  { %v141_v16 = vpop.f32.mrf.mxu0 }
  0xed   :  { %v142_v17 = vadd.f32 %v141_v16, %v78_v14 }
  0xee   :  { %v893_v18 = vpop.f32.mrf.mxu0 }
  0xef   :  { %v147_v19 = vmul.f32 %v1165_v15, %v142_v17 }
  0xf0   :  { %v144_v20 = vpop.f32.mrf.mxu0 }
  0xf1   :  { %v148_v21 = vsel %vm103_vm1, %v147_v19, 0.0 }
  0xf2   :  { %v149_v22 = vrot.slane %v148_v21, 4  ;;  %v894_v23 = vpop.f32.mrf.mxu0 }
  0xf4   :  { %v150_v24 = vadd.f32 %v149_v22, %v148_v21 }
  0xf6   :  { %v151_v25 = vrot.slane %v150_v24, 2 }
  0xf8   :  { %v152_v26 = vadd.f32 %v151_v25, %v150_v24 }
  0xfa   :  { %v153_v27 = vrot.slane %v152_v26, 1 }
  0xfc   :  { %v154_v28 = vadd.f32 %v153_v27, %v152_v26 }
  0xfe   :  { %v155_v29 = vmul.f32 0.25, %v154_v28 }
 0x100   :  { %v156_v30 = vsub.f32 %v142_v17, %v155_v29 }
 0x102   :  { %v157_v31 = vmul.f32 %v1165_v15, %v156_v30 }
 0x104   :  { %v158_v32 = vmul.f32 %v157_v31, %v157_v31 }
 0x106   :  { %v159_v33 = vsel %vm103_vm1, %v158_v32, 0.0 }
 0x107   :  { %v160_v34 = vrot.slane %v159_v33, 4 }
 0x109   :  { %v161_v35 = vadd.f32 %v160_v34, %v159_v33 }
 0x10b   :  { %v162_v36 = vrot.slane %v161_v35, 2 }
 0x10d   :  { %v163_v37 = vadd.f32 %v162_v36, %v161_v35  ;;  %v935_v35 = vld [vmem:[#allocation5 + $0x4] ss:$48 sps:$4 sm:$0xff]   ;;  %v938_v36 = vld [vmem:[#allocation5 + $0xc] ss:$48 sps:$4 sm:$0xff]  }
 0x10e   :  { %566 = vmatprep.subr.bf16.mxu1 %v935_v35  ;;  %607 = vmatprep.subr.bf16.mxu0 %v938_v36 }
 0x10f   :  { %v164_v38 = vrot.slane %v163_v37, 1 }
 0x111   :  { %v165_v39 = vadd.f32 %v164_v38, %v163_v37  ;;  %v933_v37 = vld [vmem:[#allocation5] ss:$48 sps:$4 sm:$0xff]   ;;  %v936_v38 = vld [vmem:[#allocation5 + $0x8] ss:$48 sps:$4 sm:$0xff]  }
 0x113   :  { %v166_v40 = vmul.f32 0.25, %v165_v39  ;;  %v941_v39 = vld [vmem:[#allocation5 + $0x14] ss:$48 sps:$4 sm:$0xff]  }
 0x115   :  { %v167_v41 = vadd.f32 1e-05, %v166_v40  ;;  %v1053_v40 = vmov 0  }
 0x117   :  { %951 = vrsqrt.f32 %v167_v41  ;;  %v944_v41 = vld [vmem:[#allocation5 + $0x1c] ss:$48 sps:$4 sm:$0xff]  }
 0x124   :  { %v952_v42 = vpop.eup %951 }
 0x125   :  { %v169_v43 = vmul.f32 %v952_v42, %v66_v13  ;;  %v308_v42 = vld [vmem:[#allocation2] sm:$0x7] }
 0x127   :  { %v170_v45 = vmul.f32 %v169_v43, %v155_v29  ;;  %v178_v47 = vrot.slane %v169_v43, %v1172_v44  ;;  %v316_v43 = vrot.slane %v308_v42, %v1157_v12 }
 0x129   :  { %v172_v46 = vrot.slane %v170_v45, 7  ;;  %v179_v50 = vmul.f32 %v178_v47, %v142_v17 }
 0x12b   :  { %v174_v49 = vsub.f32 %v66_v13, %v172_v46 }
 0x12d   :  { %v183_v51 = vrot.slane %v174_v49, %v1176_v48 }
 0x12f   :  { %v184_v52 = vadd.f32 %v183_v51, %v179_v50 }
 0x131   :  { %v185_v53 = vmax.f32 %v184_v52, 0.0 }
 0x133   :  { %v186_v54 = vpack.c.bf16 %v185_v53, %v185_v53 }
 0x135   :  { %904 = vmatmul.mubr.msk.bf16.vlgmr.msra.gmra.mxu1 %vm103_vm1, %v186_v54 }
 0x136   :  { %567 = vmatpush1.bf16.msra.mxu1 %v933_v37  ;;  %584 = vmatprep.mubr.bf16.mxu1 %v1053_v40  ;;  %v447_v37 = vsub.s32 4, %v1154_v11 }
 0x137   :  { %648 = vmatprep.subr.bf16.mxu1 %v941_v39 }
 0x1f5   :  { %v261_v59 = vpop.f32.mrf.mxu1 }
 0x1f6   :  { %v262_v60 = vadd.f32 %v261_v59, %v199_v58 }
 0x1f7   :  { %v905_v61 = vpop.f32.mrf.mxu1 }
 0x1f8   :  { %v267_v62 = vmul.f32 %v1165_v15, %v262_v60 }
 0x1f9   :  { %v264_v63 = vpop.f32.mrf.mxu1 }
 0x1fa   :  { %v269_v0 = vsel %vm268_vm3, %v267_v62, 0.0 }
 0x1fb   :  { %v270_v1 = vrot.slane %v269_v0, 4  ;;  %v906_v2 = vpop.f32.mrf.mxu1 }
 0x1fd   :  { %v271_v3 = vadd.f32 %v270_v1, %v269_v0 }
 0x1ff   :  { %v272_v4 = vrot.slane %v271_v3, 2 }
 0x201   :  { %v273_v5 = vadd.f32 %v272_v4, %v271_v3 }
 0x203   :  { %v274_v6 = vrot.slane %v273_v5, 1 }
 0x205   :  { %v275_v7 = vadd.f32 %v274_v6, %v273_v5 }
 0x207   :  { %v276_v8 = vmul.f32 0.25, %v275_v7 }
 0x209   :  { %v277_v9 = vsub.f32 %v262_v60, %v276_v8 }
 0x20b   :  { %v278_v10 = vmul.f32 %v1165_v15, %v277_v9 }
 0x20d   :  { %v279_v13 = vmul.f32 %v278_v10, %v278_v10 }
 0x20f   :  { %v280_v14 = vsel %vm268_vm3, %v279_v13, 0.0 }
 0x210   :  { %v281_v16 = vrot.slane %v280_v14, 4 }
 0x212   :  { %v282_v17 = vadd.f32 %v281_v16, %v280_v14 }
 0x214   :  { %v283_v18 = vrot.slane %v282_v17, 2 }
 0x216   :  { %v284_v19 = vadd.f32 %v283_v18, %v282_v17 }
 0x218   :  { %v285_v20 = vrot.slane %v284_v19, 1 }
 0x21a   :  { %v286_v21 = vadd.f32 %v285_v20, %v284_v19  ;;  %v939_v20 = vld [vmem:[#allocation5 + $0x10] ss:$48 sps:$4 sm:$0xff]  }
 0x21c   :  { %v287_v22 = vmul.f32 0.25, %v286_v21  ;;  %v942_v21 = vld [vmem:[#allocation5 + $0x18] ss:$48 sps:$4 sm:$0xff]  }
 0x21e   :  { %v288_v23 = vadd.f32 1e-05, %v287_v22 }
 0x220   :  { %953 = vrsqrt.f32 %v288_v23  ;;  %v947_v23 = vld [vmem:[#allocation5 + $0x24] ss:$48 sps:$4 sm:$0xff]  }
 0x22d   :  { %v954_v24 = vpop.eup %953 }
 0x22e   :  { %v290_v25 = vmul.f32 %v954_v24, %v187_v57  ;;  %v950_v24 = vld [vmem:[#allocation5 + $0x2c] ss:$48 sps:$4 sm:$0xff]  }
 0x230   :  { %v291_v26 = vmul.f32 %v290_v25, %v276_v8  ;;  %v299_v28 = vrot.slane %v290_v25, %v1172_v44  ;;  %v945_v25 = vld [vmem:[#allocation5 + $0x20] ss:$48 sps:$4 sm:$0xff]  }
 0x232   :  { %v293_v27 = vrot.slane %v291_v26, 7  ;;  %v300_v30 = vmul.f32 %v299_v28, %v262_v60  ;;  %v948_v26 = vld [vmem:[#allocation5 + $0x28] ss:$48 sps:$4 sm:$0xff]   ;;  %v443_v28 = vsub.s32 3, %v1154_v11 }
 0x234   :  { %v295_v29 = vsub.f32 %v187_v57, %v293_v27  ;;  %v425_v27 = vld [vmem:[%s1245_s8] sm:$0xff] }
 0x236   :  { %v304_v31 = vrot.slane %v295_v29, %v1176_v48  ;;  %v432_v29 = vrot.slane %v425_v27, %v1157_v12 }
 0x238   :  { %v305_v32 = vadd.f32 %v304_v31, %v300_v30  ;;  %v440_v30 = vrot.slane %v425_v27, %v1176_v48  ;;  %v436_v31 = vrot.slane %v425_v27, %v1172_v44 }
 0x23a   :  { %v306_v33 = vmax.f32 %v305_v32, 0.0  ;;  %v444_v32 = vrot.slane %v425_v27, %v443_v28 }
 0x23c   :  { %v307_v34 = vpack.c.bf16 %v306_v33, %v306_v33 }
 0x23e   :  { %912 = vmatmul.mubr.msk.bf16.vlgmr.msra.gmra.mxu0 %vm268_vm3, %v307_v34 }
 0x23f   :  { %608 = vmatpush1.bf16.msra.mxu0 %v936_v38  ;;  %625 = vmatprep.mubr.bf16.mxu0 %v1053_v40  ;;  %v455_v38 = vsub.s32 6, %v1154_v11 }
 0x240   :  { %689 = vmatprep.subr.bf16.mxu0 %v944_v41  ;;  %v451_v41 = vsub.s32 5, %v1154_v11 }
 0x2fe   :  { %v366_v45 = vpop.f32.mrf.mxu0 }
 0x2ff   :  { %v367_v46 = vadd.f32 %v366_v45, %v316_v43  ;;  %v459_v45 = vsub.s32 7, %v1154_v11  ;;  %v426_v11 = vld [vmem:[%s1245_s8 + $0x8] sm:$0xf]  ;;  %s1054_s8 = smov [#allocation7]  }
 0x300   :  { %v913_v47 = vpop.f32.mrf.mxu0  ;;  %s828_s21 = sshll.u32 %s1054_s8, 4  ;;  %s829_s21 = int_to_ptr.vmem [resolvable:$true] %s828_s21 }
 0x301   :  { %v372_v49 = vmul.f32 %v1165_v15, %v367_v46  ;;  %s1021_s7 = scalar_lea.vmem %s829_s21, 1536  ;;  %p1026_p11 = scmp.lt.s32.totalorder %s829_s21, %s829_s21 }
 0x302   :  { %v369_v50 = vpop.f32.mrf.mxu0  ;;  %p1022_p10 = scmp.ne.s32.totalorder %s829_s21, %s1021_s7  ;;  %p1027_p12 = scmp.lt.s32.totalorder %s1021_s7, %s1021_s7 }
 0x303   :  { %v374_v51 = vsel %vm373_vm4, %v372_v49, 0.0  ;;  %v448_v49 = vrot.slane %v425_v27, %v447_v37  ;;  %v456_v50 = vrot.slane %v425_v27, %v455_v38 }
 0x304   :  { %v375_v52 = vrot.slane %v374_v51, 4  ;;  %v914_v53 = vpop.f32.mrf.mxu0  ;;  %p1028_p13 = por %p1027_p12, %p1026_p11 }
 0x305   :  { %v452_v53 = vrot.slane %v425_v27, %v451_v41 }
 0x306   :  { %v376_v54 = vadd.f32 %v375_v52, %v374_v51  ;;  %p1029_p0 = pnand %p1028_p13, %p1022_p10 }
 0x308   :  { %v377_v55 = vrot.slane %v376_v54, 2 }
 0x30a   :  { %v378_v56 = vadd.f32 %v377_v55, %v376_v54  ;;  %v460_v54 = vrot.slane %v425_v27, %v459_v45 }
 0x30c   :  { %v379_v57 = vrot.slane %v378_v56, 1 }
 0x30e   :  { %v380_v58 = vadd.f32 %v379_v57, %v378_v56 }
 0x310   :  { %v381_v59 = vmul.f32 0.25, %v380_v58 }
 0x312   :  { %v382_v60 = vsub.f32 %v367_v46, %v381_v59 }
 0x314   :  { %v383_v61 = vmul.f32 %v1165_v15, %v382_v60 }
 0x316   :  { %v384_v62 = vmul.f32 %v383_v61, %v383_v61 }
 0x318   :  { %v385_v63 = vsel %vm373_vm4, %v384_v62, 0.0 }
 0x319   :  { %v386_v0 = vrot.slane %v385_v63, 4 }
 0x31b   :  { %v387_v1 = vadd.f32 %v386_v0, %v385_v63 }
 0x31d   :  { %v388_v2 = vrot.slane %v387_v1, 2 }
 0x31f   :  { %v389_v3 = vadd.f32 %v388_v2, %v387_v1  ;;  %v464_v1 = vrot.slane %v426_v11, %v1157_v12  ;;  %v472_v2 = vrot.slane %v426_v11, %v1176_v48 }
 0x321   :  { %v390_v4 = vrot.slane %v389_v3, 1 }
 0x323   :  { %v391_v5 = vadd.f32 %v390_v4, %v389_v3 }
 0x325   :  { %v392_v6 = vmul.f32 0.25, %v391_v5  ;;  %v468_v5 = vrot.slane %v426_v11, %v1172_v44 }
 0x327   :  { %v393_v7 = vadd.f32 1e-05, %v392_v6  ;;  %v476_v6 = vrot.slane %v426_v11, %v443_v28 }
 0x329   :  { %955 = vrsqrt.f32 %v393_v7 }
 0x336   :  { %v956_v8 = vpop.eup %955 }
 0x337   :  { %v395_v9 = vmul.f32 %v956_v8, %v308_v42 }
 0x339   :  { %v396_v10 = vmul.f32 %v395_v9, %v381_v59  ;;  %v404_v14 = vrot.slane %v395_v9, %v1172_v44 }
 0x33b   :  { %v398_v13 = vrot.slane %v396_v10, 7  ;;  %v405_v15 = vmul.f32 %v404_v14, %v367_v46 }
 0x33d   :  { %v400_v16 = vsub.f32 %v308_v42, %v398_v13 }
 0x33f   :  { %v409_v17 = vrot.slane %v400_v16, %v1176_v48 }
 0x341   :  { %v410_v18 = vadd.f32 %v409_v17, %v405_v15 }
 0x343   :  { %v411_v19 = vmax.f32 %v410_v18, 0.0 }
 0x345   :  { %v412_v22 = vpack.c.bf16 %v411_v19, %v411_v19 }
 0x347   :  { %864 = vmatmul.mubr.msk.bf16.vlgmr.msra.gmra.mxu1 %vm373_vm4, %v412_v22  ;;  %865 = vmatmul.mubr.msk.bf16.vlgmr.msra.gmra.mxu0 %vm373_vm4, %v412_v22 }
 0x348   :  { %649 = vmatpush1.bf16.msra.mxu1 %v939_v20  ;;  %690 = vmatpush1.bf16.msra.mxu0 %v942_v21 }
 0x349   :  { %666 = vmatprep.mubr.bf16.mxu1 %v1053_v40  ;;  %707 = vmatprep.mubr.bf16.mxu0 %v1053_v40 }
 0x34a   :  { %730 = vmatprep.subr.bf16.mxu1 %v947_v23  ;;  %771 = vmatprep.subr.bf16.mxu0 %v950_v24 }
 0x34f   :  { %866 = vmatmul.mubr.msk.bf16.vlgmr.msra.gmra.mxu1 %vm373_vm4, %v412_v22  ;;  %867 = vmatmul.mubr.msk.bf16.vlgmr.msra.gmra.mxu0 %vm373_vm4, %v412_v22 }
 0x350   :  { %731 = vmatpush1.bf16.msra.mxu1 %v945_v25  ;;  %772 = vmatpush1.bf16.msra.mxu0 %v948_v26 }
 0x351   :  { %748 = vmatprep.mubr.bf16.mxu1 %v1053_v40  ;;  %789 = vmatprep.mubr.bf16.mxu0 %v1053_v40 }
 0x357   :  { %868 = vmatmul.mubr.msk.bf16.vlgmr.msra.gmra.mxu1 %vm373_vm4, %v412_v22  ;;  %869 = vmatmul.mubr.msk.bf16.vlgmr.msra.gmra.mxu0 %vm373_vm4, %v412_v22 }
 0x407   :  { %v586_v33 = vpop.f32.mrf.mxu1  ;;  %v627_v34 = vpop.f32.mrf.mxu0 }
 0x408   :  { %v587_v35 = vadd.f32 %v586_v33, %v432_v29  ;;  %v628_v36 = vadd.f32 %v627_v34, %v440_v30 }
 0x409   :  { %v588_v39 = vpop.f32.mrf.mxu1  ;;  %v629_v40 = vpop.f32.mrf.mxu0 }
 0x40a   :  { %957 = vtanh.f32 %v587_v35  ;;  %v589_v42 = vadd.f32 %v588_v39, %v436_v31  ;;  %v630_v43 = vadd.f32 %v629_v40, %v444_v32 }
 0x40b   :  { %959 = vtanh.f32 %v628_v36  ;;  %v590_v46 = vpop.f32.mrf.mxu1  ;;  %v631_v47 = vpop.f32.mrf.mxu0 }
 0x40c   :  { %961 = vtanh.f32 %v589_v42 }
 0x40d   :  { %963 = vtanh.f32 %v630_v43  ;;  %v591_v51 = vpop.f32.mrf.mxu1  ;;  %v632_v52 = vpop.f32.mrf.mxu0 }
 0x40f   :  { %v668_v55 = vpop.f32.mrf.mxu1  ;;  %v709_v56 = vpop.f32.mrf.mxu0 }
 0x410   :  { %v669_v57 = vadd.f32 %v668_v55, %v448_v49  ;;  %v710_v58 = vadd.f32 %v709_v56, %v456_v50 }
 0x411   :  { %v670_v59 = vpop.f32.mrf.mxu1  ;;  %v711_v60 = vpop.f32.mrf.mxu0 }
 0x412   :  { %965 = vtanh.f32 %v669_v57  ;;  %v671_v61 = vadd.f32 %v670_v59, %v452_v53  ;;  %v712_v62 = vadd.f32 %v711_v60, %v460_v54 }
 0x413   :  { %967 = vtanh.f32 %v710_v58  ;;  %v672_v63 = vpop.f32.mrf.mxu1  ;;  %v713_v0 = vpop.f32.mrf.mxu0 }
 0x414   :  { %969 = vtanh.f32 %v671_v61 }
 0x415   :  { %971 = vtanh.f32 %v712_v62  ;;  %v673_v3 = vpop.f32.mrf.mxu1  ;;  %v714_v4 = vpop.f32.mrf.mxu0 }
 0x417   :  { %v958_v7 = vpop.eup %957  ;;  %v750_v8 = vpop.f32.mrf.mxu1 }
 0x418   :  { %v791_v9 = vpop.f32.mrf.mxu0  ;;  %v960_v10 = vpop.eup %959  ;;  %810 = vst [vmem:[#allocation7] sm:$0xff] %v958_v7  ;;  %v751_v13 = vadd.f32 %v750_v8, %v464_v1 }
 0x419   :  { %v792_v14 = vadd.f32 %v791_v9, %v472_v2  ;;  %v962_v16 = vpop.eup %961  ;;  %812 = vst [vmem:[#allocation7 + $0x10] sm:$0xff] %v960_v10  ;;  %v752_v15 = vpop.f32.mrf.mxu1 }
 0x41a   :  { %v793_v17 = vpop.f32.mrf.mxu0  ;;  %v964_v12 = vpop.eup %963  ;;  %811 = vst [vmem:[#allocation7 + $0x8] sm:$0xff] %v962_v16  ;;  %973 = vtanh.f32 %v751_v13  ;;  %v753_v48 = vadd.f32 %v752_v15, %v468_v5 }
 0x41b   :  { %v794_v18 = vadd.f32 %v793_v17, %v476_v6  ;;  %813 = vst [vmem:[#allocation7 + $0x18] sm:$0xff] %v964_v12  ;;  %975 = vtanh.f32 %v792_v14  ;;  %v754_v44 = vpop.f32.mrf.mxu1 }
 0x41c   :  { %v795_v19 = vpop.f32.mrf.mxu0  ;;  %977 = vtanh.f32 %v753_v48 }
 0x41d   :  { %979 = vtanh.f32 %v794_v18  ;;  %v755_v20 = vpop.f32.mrf.mxu1 }
 0x41e   :  { %v796_v21 = vpop.f32.mrf.mxu0 }
 0x41f   :  { %v966_v22 = vpop.eup %965 }
 0x420   :  { %v968_v23 = vpop.eup %967  ;;  %814 = vst [vmem:[#allocation7 + $0x20] sm:$0xff] %v966_v22 }
 0x421   :  { %v970_v24 = vpop.eup %969  ;;  %816 = vst [vmem:[#allocation7 + $0x30] sm:$0xff] %v968_v23 }
 0x422   :  { %v972_v25 = vpop.eup %971  ;;  %815 = vst [vmem:[#allocation7 + $0x28] sm:$0xff] %v970_v24 }
 0x423   :  { %817 = vst [vmem:[#allocation7 + $0x38] sm:$0xff] %v972_v25 }
 0x427   :  { %v974_v26 = vpop.eup %973 }
 0x428   :  { %v976_v27 = vpop.eup %975  ;;  %818 = vst [vmem:[#allocation7 + $0x40] sm:$0xff] %v974_v26 }
 0x429   :  { %v978_v28 = vpop.eup %977  ;;  %820 = vst [vmem:[#allocation7 + $0x50] sm:$0xff] %v976_v27 }
 0x42a   :  { %v980_v29 = vpop.eup %979  ;;  %819 = vst [vmem:[#allocation7 + $0x48] sm:$0xff] %v978_v28 }
 0x42b   :  { %821 = vst [vmem:[#allocation7 + $0x58] sm:$0xff] %v980_v29 }
 0x42c   :  { %1032 = shalt.err (!%p1029_p0)
}
 0x42d   :  { %831 = dma.vmem_to_hbm [thread:$0]  %s829_s21, 1536, %s1246_s9, [#allocation4]  }
 0x42e   :  { %1045 = dma.done.wait [#allocation4], 1536  }
 0x42f   :  { %1046 = vsyncadd [#allocation4], 4294965760 }
 0x430   :  { %835 = vsyncpa [#allocation3], 1 }
 0x431   :  { %836 = vsyncpa [#allocation6], 1 }
 0x432   :  { %837 = vsyncpa [#allocation4], 1 }

</bundles_post_ra>
